<compile_context>
chip_gen: v5e
topology: v5e:2x2
jax: 0.10.0
libtpu: 0.0.40
codegen_flags: <defaults>
</compile_context>

<pallas_src>
import jax
import jax.numpy as jnp
from jax.experimental import pallas as pl
from jax.experimental.pallas import tpu as pltpu

IN_DIM = 768
OUT_DIM = 64
OUT_PAD = 128          # lane-dense output slab (multiple of 128 lanes)
NEG_SLOPE = 0.01       # F.leaky_relu default negative_slope
DEFAULT_TM = 1024      # batch rows per tile (bf16 -> 1.5 MiB per x buffer)


def _round_up(x, m):
    return (x + m - 1) // m * m


def _fc_leaky_relu_kernel(x_ref, w_ref, b_ref, o_ref):
    # Matmul on the MXU (bf16 in, f32 accumulate); bias + leaky_relu on VPU.
    x = x_ref[...]                                           # (TM, 768) bf16
    w = w_ref[...]                                           # (768, 128) bf16
    b = b_ref[...]                                           # (1, 128) f32
    y = jnp.dot(x, w, preferred_element_type=jnp.float32)    # (TM, 128) f32
    y = y + b
    y = jnp.where(y > 0, y, NEG_SLOPE * y)                   # leaky_relu
    o_ref[...] = y.astype(o_ref.dtype)                       # unmasked, lane-dense


def text_subnet_forward(x, w_t, b, *, tm=DEFAULT_TM):
    """x: (B, 768) f32, w_t: (768, 64) f32, b: (64,) f32 -> (B, 64) f32."""
    B = x.shape[0]
    assert x.shape[1] == IN_DIM
    assert w_t.shape == (IN_DIM, OUT_DIM)
    assert b.shape == (OUT_DIM,)

    # Stream the dominant bytes (x, w) in bf16; accumulate f32 in the kernel.
    x_bf = x.astype(jnp.bfloat16)
    # Zero-pad weight/bias to 128 output columns -> lane-dense MXU output and
    # unmasked stores. Extra columns produce leaky_relu(0)=0 and are sliced off.
    w_pad = jnp.zeros((IN_DIM, OUT_PAD), jnp.bfloat16)
    w_pad = w_pad.at[:, :OUT_DIM].set(w_t.astype(jnp.bfloat16))
    b_pad = jnp.zeros((1, OUT_PAD), jnp.float32)
    b_pad = b_pad.at[:, :OUT_DIM].set(b.astype(jnp.float32))

    # Batch tile: at least one (8,128)-aligned tile, capped at DEFAULT_TM.
    tm = max(8, min(tm, _round_up(B, 8)))
    b_pad_rows = _round_up(B, tm)
    if b_pad_rows != B:
        x_bf = jnp.pad(x_bf, ((0, b_pad_rows - B), (0, 0)))

    grid = (pl.cdiv(b_pad_rows, tm),)

    cost = pl.CostEstimate(
        flops=2 * b_pad_rows * IN_DIM * OUT_PAD,
        transcendentals=0,
        bytes_accessed=(b_pad_rows * IN_DIM * 2          # x (bf16)
                        + IN_DIM * OUT_PAD * 2           # w (bf16)
                        + OUT_PAD * 4                    # bias (f32)
                        + b_pad_rows * OUT_PAD * 4),     # out (f32)
    )

    out = pl.pallas_call(
        _fc_leaky_relu_kernel,
        out_shape=jax.ShapeDtypeStruct((b_pad_rows, OUT_PAD), jnp.float32),
        grid=grid,
        in_specs=[
            pl.BlockSpec((tm, IN_DIM), lambda i: (i, 0)),      # streamed x tile
            pl.BlockSpec((IN_DIM, OUT_PAD), lambda i: (0, 0)),  # resident weight
            pl.BlockSpec((1, OUT_PAD), lambda i: (0, 0)),       # resident bias
        ],
        out_specs=pl.BlockSpec((tm, OUT_PAD), lambda i: (i, 0)),
        compiler_params=pltpu.CompilerParams(
            dimension_semantics=("parallel",),  # v7x: shard batch tiles over 2 TCs
        ),
        cost_estimate=cost,
    )(x_bf, w_pad, b_pad)

    return out[:B, :OUT_DIM]


def make_params(key):
    """Deterministic synthetic params matching nn.Linear(768, 64)."""
    kw, kb = jax.random.split(key)
    # PyTorch Linear weight shape is (64, 768); we store its transpose.
    bound = 1.0 / jnp.sqrt(IN_DIM)
    w = jax.random.uniform(kw, (OUT_DIM, IN_DIM), jnp.float32, -bound, bound)
    b = jax.random.uniform(kb, (OUT_DIM,), jnp.float32, -bound, bound)
    return w.T, b  # (768, 64), (64,)


if __name__ == "__main__":
    key = jax.random.PRNGKey(0)
    k_x, k_p = jax.random.split(key)

    batch = 2  # exercises the B % TM != 0 padding path (pads 2 -> 8 rows)
    x = jax.random.normal(k_x, (batch, IN_DIM), jnp.float32)
    w_t, b = make_params(k_p)

    y = text_subnet_forward(x, w_t, b)
    jax.block_until_ready(y)

    # Reference of the same math (bf16-cast inputs, f32 accumulate) in plain JAX.
    x_q = x.astype(jnp.bfloat16).astype(jnp.float32)
    w_q = w_t.astype(jnp.bfloat16).astype(jnp.float32)
    y_ref = x_q @ w_q + b
    y_ref = jnp.where(y_ref > 0, y_ref, NEG_SLOPE * y_ref)

    assert y.shape == (batch, OUT_DIM)
    assert jnp.allclose(y, y_ref, atol=1e-3, rtol=1e-3)

    print("KERNEL_OK")
</pallas_src>

<mosaic_0001>
module attributes {stable_mosaic.version = 11 : i64} {
  func.func @_fc_leaky_relu_kernel(%arg0: i32, %arg1: memref<8x768xbf16, #tpu.memory_space<vmem>>, %arg2: memref<768x128xbf16, #tpu.memory_space<vmem>>, %arg3: memref<1x128xf32, #tpu.memory_space<vmem>>, %arg4: memref<8x128xf32, #tpu.memory_space<vmem>>) attributes {dimension_semantics = [#tpu.dimension_semantics<parallel>], iteration_bounds = array<i64: 1>, scalar_prefetch = 0 : i64, scratch_operands = 0 : i64, tpu.core_type = #tpu.core_type<tc>, window_params = [{transform_indices = @transform_0, window_bounds = array<i64: 8, 768>}, {pipeline_mode = #tpu.pipeline_mode<synchronous>, transform_indices = @transform_1, window_bounds = array<i64: 768, 128>}, {pipeline_mode = #tpu.pipeline_mode<synchronous>, transform_indices = @transform_2, window_bounds = array<i64: 1, 128>}, {transform_indices = @transform_3, window_bounds = array<i64: 8, 128>}]} {
    %c0 = arith.constant 0 : index
    %c0_0 = arith.constant 0 : index
    %0 = vector.load %arg1[%c0, %c0_0] : memref<8x768xbf16, #tpu.memory_space<vmem>>, vector<8x768xbf16>
    %c0_1 = arith.constant 0 : index
    %c0_2 = arith.constant 0 : index
    %1 = vector.load %arg2[%c0_1, %c0_2] : memref<768x128xbf16, #tpu.memory_space<vmem>>, vector<768x128xbf16>
    %c0_3 = arith.constant 0 : index
    %c0_4 = arith.constant 0 : index
    %2 = vector.load %arg3[%c0_3, %c0_4] : memref<1x128xf32, #tpu.memory_space<vmem>>, vector<1x128xf32>
    %cst = arith.constant dense<0.000000e+00> : vector<8x128xf32>
    %3 = tpu.matmul %0, %1, %cst {dimension_numbers = #tpu.dot_dimension_numbers<[1], [0], [0], [1], [0, 0, 1, 1], [], []>} : vector<8x768xbf16>, vector<768x128xbf16>, vector<8x128xf32> -> vector<8x128xf32>
    %4 = vector.broadcast %2 : vector<1x128xf32> to vector<8x128xf32>
    %5 = arith.addf %3, %4 : vector<8x128xf32>
    %cst_5 = arith.constant 0.000000e+00 : f32
    %6 = vector.broadcast %cst_5 : f32 to vector<8x128xf32>
    %7 = arith.cmpf ogt, %5, %6 : vector<8x128xf32>
    %cst_6 = arith.constant 0.00999999977 : f32
    %8 = vector.broadcast %cst_6 : f32 to vector<8x128xf32>
    %9 = arith.mulf %8, %5 : vector<8x128xf32>
    %10 = arith.select %7, %5, %9 : vector<8x128xi1>, vector<8x128xf32>
    %c0_7 = arith.constant 0 : index
    %c0_8 = arith.constant 0 : index
    %11 = vector.load %arg4[%c0_7, %c0_8] : memref<8x128xf32, #tpu.memory_space<vmem>>, vector<8x128xf32>
    tpu.vector_store %arg4[%c0_7, %c0_8], %10 {strides = array<i32>} : memref<8x128xf32, #tpu.memory_space<vmem>>, vector<8x128xf32>,
    return
  }
  func.func @transform_0(%arg0: i32) -> (i32, i32) {
    %c0_i32 = arith.constant 0 : i32
    %c0_i32_0 = arith.constant 0 : i32
    return %arg0, %c0_i32 : i32, i32
  }
  func.func @transform_1(%arg0: i32) -> (i32, i32) {
    %c0_i32 = arith.constant 0 : i32
    %c0_i32_0 = arith.constant 0 : i32
    %c0_i32_1 = arith.constant 0 : i32
    return %c0_i32, %c0_i32_0 : i32, i32
  }
  func.func @transform_2(%arg0: i32) -> (i32, i32) {
    %c0_i32 = arith.constant 0 : i32
    %c0_i32_0 = arith.constant 0 : i32
    %c0_i32_1 = arith.constant 0 : i32
    return %c0_i32, %c0_i32_0 : i32, i32
  }
  func.func @transform_3(%arg0: i32) -> (i32, i32) {
    %c0_i32 = arith.constant 0 : i32
    %c0_i32_0 = arith.constant 0 : i32
    return %arg0, %c0_i32 : i32, i32
  }
}

</mosaic_0001>

<bundles_post_ra>
// kernel: tpu_custom_call.1
= control target key start
LH: loop header
LB: loop body
LE: loop exit
PB: predicated region body
PF: predicated region fallthrough
CT: control target
= control target key end

     0   :  { %8 = vsyncpa [#allocation3], 0  ;;  %s918_s0 = inlined_call_operand.hbm [shape: bf16[8,768], index: 0, kind: input, shape index: {}]   ;;  %s919_s1 = inlined_call_operand.hbm [shape: bf16[768,128], index: 1, kind: input, shape index: {}]   ;;  %s920_s2 = inlined_call_operand.vmem [shape: f32[1,128], index: 2, kind: input, shape index: {}]   ;;  %s921_s3 = inlined_call_operand.hbm [shape: f32[8,128], index: 3, kind: output, shape index: {}]  }
   0x1   :  { %9 = vsyncpa [#allocation6], 0 }
   0x2   :  { %10 = vsyncpa [#allocation4], 0  ;;  %s16_s14 = sshll.u32 %s918_s0, 4  ;;  %s881_s15 = smov [#allocation2]   ;;  %s17_s14 = int_to_ptr.hbm [resolvable:$true] %s16_s14 }
   0x3   :  { %s18_s16 = sshll.u32 %s881_s15, 4  ;;  %s26_s19 = sshll.u32 %s919_s1, 4  ;;  %s19_s16 = int_to_ptr.vmem [resolvable:$true] %s18_s16  ;;  %s27_s19 = int_to_ptr.hbm [resolvable:$true] %s26_s19 }
   0x4   :  { %21 = dma.hbm_to_vmem [thread:$0]  %s17_s14, 384, %s19_s16, [#allocation3]  }
   0x5   :  { %s882_s20 = smov [#allocation5]   ;;  %s883_s22 = smov 64  }
   0x6   :  { %s28_s21 = sshll.u32 %s882_s20, 4  ;;  %s884_s23 = smov 4   ;;  %s29_s21 = int_to_ptr.vmem [resolvable:$true] %s28_s21 }
   0x7   :  { %34 = dma.hbm_to_vmem [thread:$0]  %s27_s19, 6144, %s29_s21, [#allocation6], %s883_s22, %s883_s22, %s884_s23  }
   0x8   :  { %875 = dma.done.wait [#allocation3], 384  }
   0x9   :  { %876 = vsyncadd [#allocation3], 4294966912 }
   0xa   :  { %877 = dma.done.wait [#allocation6], 6144  }
   0xb   :  { %878 = vsyncadd [#allocation6], 4294961152  ;;  %v756_v0 = vld [vmem:[#allocation5 + $0x38] sm:$0xff]  ;;  %v755_v2 = vld [vmem:[#allocation5 + $0x30] sm:$0xff]  ;;  %s885_s24 = smov [#allocation7]   ;;  %s546_s28 = sshll.u32 %s921_s3, 4  ;;  %s547_s28 = int_to_ptr.hbm [resolvable:$true] %s546_s28 }
   0xc   :  { %v764_v1 = vld [vmem:[#allocation5 + $0x78] sm:$0xff]  ;;  %457 = vmatpush.bf16.msra.mxu0 %v756_v0  ;;  %v763_v3 = vld [vmem:[#allocation5 + $0x70] sm:$0xff]  ;;  %v754_v8 = vld [vmem:[#allocation5 + $0x28] sm:$0xff]  ;;  %s544_s25 = sshll.u32 %s885_s24, 4  ;;  %s545_s25 = int_to_ptr.vmem [resolvable:$true] %s544_s25 }
   0xd   :  { %470 = vmatpush.bf16.msra.mxu1 %v764_v1  ;;  %v772_v4 = vld [vmem:[#allocation5 + $0xb8] sm:$0xff]  ;;  %v771_v6 = vld [vmem:[#allocation5 + $0xb0] sm:$0xff]  ;;  %v762_v9 = vld [vmem:[#allocation5 + $0x68] sm:$0xff] }
   0xe   :  { %v780_v5 = vld [vmem:[#allocation5 + $0xf8] sm:$0xff]  ;;  %483 = vmatpush.bf16.msra.mxu2 %v772_v4  ;;  %v779_v7 = vld [vmem:[#allocation5 + $0xf0] sm:$0xff]  ;;  %v770_v10 = vld [vmem:[#allocation5 + $0xa8] sm:$0xff] }
   0xf   :  { %496 = vmatpush.bf16.msra.mxu3 %v780_v5  ;;  %v778_v11 = vld [vmem:[#allocation5 + $0xe8] sm:$0xff]  ;;  %v753_v12 = vld [vmem:[#allocation5 + $0x20] sm:$0xff]  ;;  %v752_v16 = vld [vmem:[#allocation5 + $0x18] sm:$0xff] }
  0x10   :  { %458 = vmatpush.bf16.msra.mxu0 %v755_v2  ;;  %v761_v13 = vld [vmem:[#allocation5 + $0x60] sm:$0xff]  ;;  %v760_v17 = vld [vmem:[#allocation5 + $0x58] sm:$0xff]  ;;  %v751_v20 = vld [vmem:[#allocation5 + $0x10] sm:$0xff] }
  0x11   :  { %471 = vmatpush.bf16.msra.mxu1 %v763_v3  ;;  %v769_v14 = vld [vmem:[#allocation5 + $0xa0] sm:$0xff]  ;;  %v768_v18 = vld [vmem:[#allocation5 + $0x98] sm:$0xff]  ;;  %v759_v21 = vld [vmem:[#allocation5 + $0x50] sm:$0xff] }
  0x12   :  { %484 = vmatpush.bf16.msra.mxu2 %v771_v6  ;;  %v777_v15 = vld [vmem:[#allocation5 + $0xe0] sm:$0xff]  ;;  %v776_v19 = vld [vmem:[#allocation5 + $0xd8] sm:$0xff]  ;;  %v767_v22 = vld [vmem:[#allocation5 + $0x90] sm:$0xff] }
  0x13   :  { %497 = vmatpush.bf16.msra.mxu3 %v779_v7  ;;  %v775_v23 = vld [vmem:[#allocation5 + $0xd0] sm:$0xff]  ;;  %v750_v24 = vld [vmem:[#allocation5 + $0x8] sm:$0xff]  ;;  %v749_v32 = vld [vmem:[#allocation5] sm:$0xff] }
  0x14   :  { %459 = vmatpush.bf16.msra.mxu0 %v754_v8  ;;  %v758_v25 = vld [vmem:[#allocation5 + $0x48] sm:$0xff]  ;;  %v46_v31 = vld [vmem:[#allocation2 + $0x8] sm:$0xff]  ;;  %v757_v33 = vld [vmem:[#allocation5 + $0x40] sm:$0xff] }
  0x15   :  { %472 = vmatpush.bf16.msra.mxu1 %v762_v9  ;;  %v45_v26 = vld [vmem:[#allocation2] sm:$0xff]  ;;  %v788_v34 = vld [vmem:[#allocation5 + $0x138] sm:$0xff]  ;;  %v765_v36 = vld [vmem:[#allocation5 + $0x80] sm:$0xff]  ;;  %v153_v37 = vunpack.c.l.b16 %v46_v31  ;;  %v154_v40 = vunpack.c.h.b16 %v46_v31 }
  0x16   :  { %485 = vmatpush.bf16.msra.mxu2 %v770_v10  ;;  %v766_v27 = vld [vmem:[#allocation5 + $0x88] sm:$0xff]  ;;  %v151_v28 = vunpack.c.l.b16 %v45_v26  ;;  %v152_v30 = vunpack.c.h.b16 %v45_v26  ;;  %v796_v35 = vld [vmem:[#allocation5 + $0x178] sm:$0xff]  ;;  %v773_v41 = vld [vmem:[#allocation5 + $0xc0] sm:$0xff] }
  0x17   :  { %498 = vmatpush.bf16.msra.mxu3 %v778_v11  ;;  %v774_v29 = vld [vmem:[#allocation5 + $0xc8] sm:$0xff]  ;;  %v787_v42 = vld [vmem:[#allocation5 + $0x130] sm:$0xff]  ;;  %v159_v44 = vpack.c.b16 %v153_v37, %v153_v37  ;;  %v160_v45 = vpack.c.b16 %v154_v40, %v154_v40  ;;  %v785_v48 = vld [vmem:[#allocation5 + $0x120] sm:$0xff] }
  0x18   :  { %460 = vmatpush.bf16.msra.mxu0 %v753_v12  ;;  %v157_v38 = vpack.c.b16 %v151_v28, %v151_v28  ;;  %v158_v39 = vpack.c.b16 %v152_v30, %v152_v30  ;;  %v795_v43 = vld [vmem:[#allocation5 + $0x170] sm:$0xff]  ;;  %v786_v46 = vld [vmem:[#allocation5 + $0x128] sm:$0xff]  ;;  %v793_v49 = vld [vmem:[#allocation5 + $0x160] sm:$0xff] }
  0x19   :  { %473 = vmatpush.bf16.msra.mxu1 %v761_v13  ;;  %v794_v47 = vld [vmem:[#allocation5 + $0x168] sm:$0xff]  ;;  %v784_v50 = vld [vmem:[#allocation5 + $0x118] sm:$0xff]  ;;  %v783_v52 = vld [vmem:[#allocation5 + $0x110] sm:$0xff] }
  0x1a   :  { %486 = vmatpush.bf16.msra.mxu2 %v769_v14  ;;  %v792_v51 = vld [vmem:[#allocation5 + $0x158] sm:$0xff]  ;;  %v791_v53 = vld [vmem:[#allocation5 + $0x150] sm:$0xff]  ;;  %v782_v54 = vld [vmem:[#allocation5 + $0x108] sm:$0xff] }
  0x1b   :  { %499 = vmatpush.bf16.msra.mxu3 %v777_v15  ;;  %v790_v55 = vld [vmem:[#allocation5 + $0x148] sm:$0xff]  ;;  %v47_v56 = vld [vmem:[#allocation2 + $0x10] sm:$0xff]  ;;  %v781_v59 = vld [vmem:[#allocation5 + $0x100] sm:$0xff] }
  0x1c   :  { %461 = vmatpush.bf16.msra.mxu0 %v752_v16  ;;  %v155_v57 = vunpack.c.l.b16 %v47_v56  ;;  %v156_v58 = vunpack.c.h.b16 %v47_v56  ;;  %v789_v60 = vld [vmem:[#allocation5 + $0x140] sm:$0xff]  ;;  %v802_v5 = vld [vmem:[%s920_s2] ss:$0 sm:$0xff] }
  0x1d   :  { %474 = vmatpush.bf16.msra.mxu1 %v760_v17 }
  0x1e   :  { %487 = vmatpush.bf16.msra.mxu2 %v768_v18  ;;  %v161_v61 = vpack.c.b16 %v155_v57, %v155_v57  ;;  %v162_v62 = vpack.c.b16 %v156_v58, %v156_v58 }
  0x1f   :  { %500 = vmatpush.bf16.msra.mxu3 %v776_v19 }
  0x20   :  { %462 = vmatpush.bf16.msra.mxu0 %v751_v20 }
  0x21   :  { %475 = vmatpush.bf16.msra.mxu1 %v759_v21 }
  0x22   :  { %488 = vmatpush.bf16.msra.mxu2 %v767_v22 }
  0x23   :  { %501 = vmatpush.bf16.msra.mxu3 %v775_v23 }
  0x24   :  { %463 = vmatpush.bf16.msra.mxu0 %v750_v24 }
  0x25   :  { %476 = vmatpush.bf16.msra.mxu1 %v758_v25 }
  0x26   :  { %489 = vmatpush.bf16.msra.mxu2 %v766_v27 }
  0x27   :  { %502 = vmatpush.bf16.msra.mxu3 %v774_v29 }
  0x28   :  { %464 = vmatpush.bf16.msra.mxu0 %v749_v32 }
  0x29   :  { %477 = vmatpush.bf16.msra.mxu1 %v757_v33 }
  0x2a   :  { %490 = vmatpush.bf16.msra.mxu2 %v765_v36 }
  0x2b   :  { %465 = vmatmul.bf16.vlgmr.msra.gmra.mxu0 %v157_v38  ;;  %503 = vmatpush.bf16.msra.mxu3 %v773_v41 }
  0x2c   :  { %509 = vmatpush.bf16.msrb.mxu0 %v788_v34  ;;  %478 = vmatmul.bf16.vlgmr.msra.gmra.mxu1 %v158_v39 }
  0x2d   :  { %522 = vmatpush.bf16.msrb.mxu1 %v796_v35  ;;  %491 = vmatmul.bf16.vlgmr.msra.gmra.mxu2 %v159_v44 }
  0x2e   :  { %504 = vmatmul.bf16.vlgmr.msra.gmra.mxu3 %v160_v45 }
  0x30   :  { %510 = vmatpush.bf16.msrb.mxu0 %v787_v42 }
  0x31   :  { %523 = vmatpush.bf16.msrb.mxu1 %v795_v43 }
  0x34   :  { %511 = vmatpush.bf16.msrb.mxu0 %v786_v46 }
  0x35   :  { %524 = vmatpush.bf16.msrb.mxu1 %v794_v47 }
  0x38   :  { %512 = vmatpush.bf16.msrb.mxu0 %v785_v48 }
  0x39   :  { %525 = vmatpush.bf16.msrb.mxu1 %v793_v49 }
  0x3c   :  { %513 = vmatpush.bf16.msrb.mxu0 %v784_v50 }
  0x3d   :  { %526 = vmatpush.bf16.msrb.mxu1 %v792_v51 }
  0x40   :  { %514 = vmatpush.bf16.msrb.mxu0 %v783_v52 }
  0x41   :  { %527 = vmatpush.bf16.msrb.mxu1 %v791_v53 }
  0x44   :  { %515 = vmatpush.bf16.msrb.mxu0 %v782_v54 }
  0x45   :  { %528 = vmatpush.bf16.msrb.mxu1 %v790_v55 }
  0x48   :  { %516 = vmatpush.bf16.msrb.mxu0 %v781_v59 }
  0x49   :  { %529 = vmatpush.bf16.msrb.mxu1 %v789_v60 }
  0x4b   :  { %517 = vmatmul.bf16.vlgmr.msrb.gmra.mxu0 %v161_v61 }
  0x4c   :  { %530 = vmatmul.bf16.vlgmr.msrb.gmra.mxu1 %v162_v62 }
  0xa8   :  { %v466_v63 = vpop.f32.mrf.mxu0 }
  0xa9   :  { %v479_v0 = vpop.f32.mrf.mxu1  ;;  %v467_v6 = vadd.f32 %v802_v5, %v466_v63 }
  0xab   :  { %v480_v9 = vadd.f32 %v479_v0, %v467_v6 }
  0xb0   :  { %v468_v1 = vpop.f32.mrf.mxu0  ;;  %v492_v3 = vpop.f32.mrf.mxu2 }
  0xb1   :  { %v481_v2 = vpop.f32.mrf.mxu1  ;;  %v505_v4 = vpop.f32.mrf.mxu3  ;;  %v493_v10 = vadd.f32 %v492_v3, %v480_v9 }
  0xb3   :  { %v506_v11 = vadd.f32 %v505_v4, %v493_v10 }
  0xb8   :  { %v494_v7 = vpop.f32.mrf.mxu2 }
  0xb9   :  { %v507_v8 = vpop.f32.mrf.mxu3 }
  0xc8   :  { %v518_v12 = vpop.f32.mrf.mxu0 }
  0xc9   :  { %v531_v13 = vpop.f32.mrf.mxu1  ;;  %v519_v14 = vadd.f32 %v518_v12, %v506_v11 }
  0xcb   :  { %v532_v15 = vadd.f32 %v531_v13, %v519_v14 }
  0xcd   :  { %vm535_vm0 = vcmp.gt.f32.partialorder %v532_v15, 0.0  ;;  %v536_v16 = vmul.f32 0.01, %v532_v15 }
  0xcf   :  { %v537_v17 = vsel %vm535_vm0, %v532_v15, %v536_v16 }
  0xd0   :  { %v520_v18 = vpop.f32.mrf.mxu0  ;;  %538 = vst [vmem:[#allocation7] sm:$0xff] %v537_v17 }
  0xd1   :  { %v533_v19 = vpop.f32.mrf.mxu1  ;;  %549 = dma.vmem_to_hbm [thread:$0]  %s545_s25, 128, %s547_s28, [#allocation4]  }
  0xd2   :  { %879 = dma.done.wait [#allocation4], 128  }
  0xd3   :  { %880 = vsyncadd [#allocation4], 4294967168 }
  0xd4   :  { %554 = vsyncpa [#allocation3], 1 }
  0xd5   :  { %555 = vsyncpa [#allocation6], 1 }
  0xd6   :  { %556 = vsyncpa [#allocation4], 1 }

</bundles_post_ra>
